<compile_context>
chip_gen: v6e
topology: v6e:2x2x1
jax: 0.10.0
libtpu: 0.0.40
codegen_flags: <defaults>
</compile_context>

<pallas_src>
import jax
import jax.numpy as jnp
from jax.experimental import pallas as pl
from jax.experimental.pallas import tpu as pltpu

_IN_F = 14
_HID = 128
_OUT_F = 256
# Per-tile VMEM (double buffered): ~TILE_B * (14 + 256) * 4B * 2 ≈ 4.4 MiB at
# 2048 rows — comfortably inside v7x's 32 MiB scoped / 64 MiB physical VMEM.
_MAX_TILE_B = 2048


def _mlp_kernel(x_ref, w1_ref, b1_ref, w2_ref, b2_ref, o_ref):
    # Fused hot path: matmul -> bias -> ReLU -> matmul -> bias -> ReLU.
    x = x_ref[...]                                       # (TILE_B, 14)
    h = jnp.dot(x, w1_ref[...],
                preferred_element_type=jnp.float32)      # (TILE_B, 128)  MXU
    h = jnp.maximum(h + b1_ref[...], 0.0)                # bias bcast + ReLU (VPU)
    o = jnp.dot(h, w2_ref[...],
                preferred_element_type=jnp.float32)      # (TILE_B, 256)  MXU
    o_ref[...] = jnp.maximum(o + b2_ref[...], 0.0).astype(o_ref.dtype)


def pose_stream_forward(x, w1, b1, w2, b2):
    """x: (B, ...) flattened to (B, 14). Returns (B, 256) float32."""
    x2d = x.reshape(x.shape[0], -1)                      # == torch flatten(1)
    assert x2d.shape[1] == _IN_F, f"expected {_IN_F} features, got {x2d.shape[1]}"
    B = x2d.shape[0]

    # Batch tile: multiple of 8 sublanes, capped for v7x VMEM headroom.
    tile_b = min(_MAX_TILE_B, max(8, ((B + 7) // 8) * 8))
    num_tiles = pl.cdiv(B, tile_b)
    b_padded = num_tiles * tile_b
    if b_padded != B:
        # Pad ragged batch in the wrapper so every tile's stores are full,
        # lane-dense, unmasked vst; padded rows are sliced off afterwards.
        x2d = jnp.pad(x2d, ((0, b_padded - B), (0, 0)))

    flops = 2 * b_padded * (_IN_F * _HID + _HID * _OUT_F)
    bytes_accessed = (b_padded * (_IN_F + _OUT_F) * 4
                      + (_IN_F * _HID + _HID + _HID * _OUT_F + _OUT_F) * 4)

    out = pl.pallas_call(
        _mlp_kernel,
        out_shape=jax.ShapeDtypeStruct((b_padded, _OUT_F), jnp.float32),
        grid=(num_tiles,),
        in_specs=[
            pl.BlockSpec((tile_b, _IN_F), lambda i: (i, 0)),   # x tile, pipelined
            pl.BlockSpec((_IN_F, _HID), lambda i: (0, 0)),     # w1 resident
            pl.BlockSpec((1, _HID), lambda i: (0, 0)),         # b1 resident
            pl.BlockSpec((_HID, _OUT_F), lambda i: (0, 0)),    # w2 resident
            pl.BlockSpec((1, _OUT_F), lambda i: (0, 0)),       # b2 resident
        ],
        out_specs=pl.BlockSpec((tile_b, _OUT_F), lambda i: (i, 0)),
        compiler_params=pltpu.CompilerParams(
            dimension_semantics=("parallel",),   # shard batch across v7x's 2 TCs
            vmem_limit_bytes=32 * 1024 * 1024,
        ),
        cost_estimate=pl.CostEstimate(
            flops=flops, transcendentals=0, bytes_accessed=bytes_accessed),
    )(x2d, w1, b1, w2, b2)

    return out[:B] if b_padded != B else out


def init_params(key):
    """Deterministic synthetic init mirroring nn.Linear shapes.

    PyTorch nn.Linear(in, out) holds weight (out, in), bias (out,) with
    U(-1/sqrt(in), 1/sqrt(in)) init. Same distribution here, weights stored
    transposed as (in, out) for the x @ W kernel convention.
    """
    k1, k2, k3, k4 = jax.random.split(key, 4)
    lim1 = 1.0 / jnp.sqrt(float(_IN_F))
    lim2 = 1.0 / jnp.sqrt(float(_HID))
    w1 = jax.random.uniform(k1, (_IN_F, _HID), jnp.float32, -lim1, lim1)
    b1 = jax.random.uniform(k2, (1, _HID), jnp.float32, -lim1, lim1)
    w2 = jax.random.uniform(k3, (_HID, _OUT_F), jnp.float32, -lim2, lim2)
    b2 = jax.random.uniform(k4, (1, _OUT_F), jnp.float32, -lim2, lim2)
    return w1, b1, w2, b2


def _reference(x, w1, b1, w2, b2):
    x2d = x.reshape(x.shape[0], -1)
    h = jnp.maximum(x2d @ w1 + b1, 0.0)
    return jnp.maximum(h @ w2 + b2, 0.0)


if __name__ == "__main__":
    key = jax.random.PRNGKey(0)
    kx, kx2, kp = jax.random.split(key, 3)
    w1, b1, w2, b2 = init_params(kp)

    # Pose input: (batch=2, 7 keypoints, 2 coords) -> flatten(1) -> (2, 14)
    x = jax.random.normal(kx, (2, 7, 2), dtype=jnp.float32)
    out = jax.block_until_ready(pose_stream_forward(x, w1, b1, w2, b2))
    ref = _reference(x, w1, b1, w2, b2)
    assert out.shape == (2, 256)
    assert jnp.allclose(out, ref, atol=1e-5, rtol=1e-5)

    # Ragged batch (not a multiple of 8) exercises the pad-and-slice path.
    x2 = jax.random.normal(kx2, (19, 7, 2), dtype=jnp.float32)
    out2 = jax.block_until_ready(pose_stream_forward(x2, w1, b1, w2, b2))
    ref2 = _reference(x2, w1, b1, w2, b2)
    assert out2.shape == (19, 256)
    assert jnp.allclose(out2, ref2, atol=1e-5, rtol=1e-5)

    print("KERNEL_OK")
</pallas_src>

<mosaic_0001>
module attributes {stable_mosaic.version = 11 : i64} {
  func.func @_mlp_kernel(%arg0: i32, %arg1: memref<8x14xf32, #tpu.memory_space<vmem>>, %arg2: memref<14x128xf32, #tpu.memory_space<vmem>>, %arg3: memref<1x128xf32, #tpu.memory_space<vmem>>, %arg4: memref<128x256xf32, #tpu.memory_space<vmem>>, %arg5: memref<1x256xf32, #tpu.memory_space<vmem>>, %arg6: memref<8x256xf32, #tpu.memory_space<vmem>>) attributes {dimension_semantics = [#tpu.dimension_semantics<parallel>], iteration_bounds = array<i64: 1>, scalar_prefetch = 0 : i64, scratch_operands = 0 : i64, tpu.core_type = #tpu.core_type<tc>, window_params = [{transform_indices = @transform_0, window_bounds = array<i64: 8, 14>}, {pipeline_mode = #tpu.pipeline_mode<synchronous>, transform_indices = @transform_1, window_bounds = array<i64: 14, 128>}, {pipeline_mode = #tpu.pipeline_mode<synchronous>, transform_indices = @transform_2, window_bounds = array<i64: 1, 128>}, {pipeline_mode = #tpu.pipeline_mode<synchronous>, transform_indices = @transform_3, window_bounds = array<i64: 128, 256>}, {pipeline_mode = #tpu.pipeline_mode<synchronous>, transform_indices = @transform_4, window_bounds = array<i64: 1, 256>}, {transform_indices = @transform_5, window_bounds = array<i64: 8, 256>}]} {
    %c0 = arith.constant 0 : index
    %c0_0 = arith.constant 0 : index
    %0 = vector.load %arg1[%c0, %c0_0] : memref<8x14xf32, #tpu.memory_space<vmem>>, vector<8x14xf32>
    %c0_1 = arith.constant 0 : index
    %c0_2 = arith.constant 0 : index
    %1 = vector.load %arg2[%c0_1, %c0_2] : memref<14x128xf32, #tpu.memory_space<vmem>>, vector<14x128xf32>
    %cst = arith.constant dense<0.000000e+00> : vector<8x128xf32>
    %2 = tpu.matmul %0, %1, %cst {dimension_numbers = #tpu.dot_dimension_numbers<[1], [0], [0], [1], [0, 0, 1, 1], [], []>} : vector<8x14xf32>, vector<14x128xf32>, vector<8x128xf32> -> vector<8x128xf32>
    %c0_3 = arith.constant 0 : index
    %c0_4 = arith.constant 0 : index
    %3 = vector.load %arg3[%c0_3, %c0_4] : memref<1x128xf32, #tpu.memory_space<vmem>>, vector<1x128xf32>
    %4 = vector.broadcast %3 : vector<1x128xf32> to vector<8x128xf32>
    %5 = arith.addf %2, %4 : vector<8x128xf32>
    %cst_5 = arith.constant 0.000000e+00 : f32
    %6 = vector.broadcast %cst_5 : f32 to vector<8x128xf32>
    %7 = arith.maximumf %5, %6 : vector<8x128xf32>
    %c0_6 = arith.constant 0 : index
    %c0_7 = arith.constant 0 : index
    %8 = vector.load %arg4[%c0_6, %c0_7] : memref<128x256xf32, #tpu.memory_space<vmem>>, vector<128x256xf32>
    %cst_8 = arith.constant dense<0.000000e+00> : vector<8x256xf32>
    %9 = tpu.matmul %7, %8, %cst_8 {dimension_numbers = #tpu.dot_dimension_numbers<[1], [0], [0], [1], [0, 0, 1, 1], [], []>} : vector<8x128xf32>, vector<128x256xf32>, vector<8x256xf32> -> vector<8x256xf32>
    %c0_9 = arith.constant 0 : index
    %c0_10 = arith.constant 0 : index
    %10 = vector.load %arg5[%c0_9, %c0_10] : memref<1x256xf32, #tpu.memory_space<vmem>>, vector<1x256xf32>
    %11 = vector.broadcast %10 : vector<1x256xf32> to vector<8x256xf32>
    %12 = arith.addf %9, %11 : vector<8x256xf32>
    %cst_11 = arith.constant 0.000000e+00 : f32
    %13 = vector.broadcast %cst_11 : f32 to vector<8x256xf32>
    %14 = arith.maximumf %12, %13 : vector<8x256xf32>
    %c0_12 = arith.constant 0 : index
    %c0_13 = arith.constant 0 : index
    %15 = vector.load %arg6[%c0_12, %c0_13] : memref<8x256xf32, #tpu.memory_space<vmem>>, vector<8x256xf32>
    tpu.vector_store %arg6[%c0_12, %c0_13], %14 {strides = array<i32>} : memref<8x256xf32, #tpu.memory_space<vmem>>, vector<8x256xf32>,
    return
  }
  func.func @transform_0(%arg0: i32) -> (i32, i32) {
    %c0_i32 = arith.constant 0 : i32
    %c0_i32_0 = arith.constant 0 : i32
    return %arg0, %c0_i32 : i32, i32
  }
  func.func @transform_1(%arg0: i32) -> (i32, i32) {
    %c0_i32 = arith.constant 0 : i32
    %c0_i32_0 = arith.constant 0 : i32
    %c0_i32_1 = arith.constant 0 : i32
    return %c0_i32, %c0_i32_0 : i32, i32
  }
  func.func @transform_2(%arg0: i32) -> (i32, i32) {
    %c0_i32 = arith.constant 0 : i32
    %c0_i32_0 = arith.constant 0 : i32
    %c0_i32_1 = arith.constant 0 : i32
    return %c0_i32, %c0_i32_0 : i32, i32
  }
  func.func @transform_3(%arg0: i32) -> (i32, i32) {
    %c0_i32 = arith.constant 0 : i32
    %c0_i32_0 = arith.constant 0 : i32
    %c0_i32_1 = arith.constant 0 : i32
    return %c0_i32, %c0_i32_0 : i32, i32
  }
  func.func @transform_4(%arg0: i32) -> (i32, i32) {
    %c0_i32 = arith.constant 0 : i32
    %c0_i32_0 = arith.constant 0 : i32
    %c0_i32_1 = arith.constant 0 : i32
    return %c0_i32, %c0_i32_0 : i32, i32
  }
  func.func @transform_5(%arg0: i32) -> (i32, i32) {
    %c0_i32 = arith.constant 0 : i32
    %c0_i32_0 = arith.constant 0 : i32
    return %arg0, %c0_i32 : i32, i32
  }
}

</mosaic_0001>

<bundles_post_ra>
// kernel: tpu_custom_call.1
= control target key start
LH: loop header
LB: loop body
LE: loop exit
PB: predicated region body
PF: predicated region fallthrough
CT: control target
= control target key end

     0   :  { %10 = vsyncpa [#allocation3], 0  ;;  %s451_s0 = inlined_call_operand.hbm [shape: f32[8,14], index: 0, kind: input, shape index: {}]   ;;  %s452_s1 = inlined_call_operand.hbm [shape: f32[14,128], index: 1, kind: input, shape index: {}]   ;;  %s453_s2 = inlined_call_operand.vmem [shape: f32[1,128], index: 2, kind: input, shape index: {}]   ;;  %s454_s3 = inlined_call_operand.hbm [shape: f32[128,256], index: 3, kind: input, shape index: {}]   ;;  %s455_s4 = inlined_call_operand.vmem [shape: f32[1,256], index: 4, kind: input, shape index: {}]   ;;  %s456_s5 = inlined_call_operand.hbm [shape: f32[8,256], index: 5, kind: output, shape index: {}]  }
   0x1   :  { %11 = vsyncpa [#allocation6], 0 }
   0x2   :  { %12 = vsyncpa [#allocation4], 0  ;;  %s393_s18 = smov [#allocation5]  }
   0x3   :  { %s28_s19 = sshll.u32 %s393_s18, 4  ;;  %s29_s19 = int_to_ptr.vmem [resolvable:$true] %s28_s19 }
   0x4   :  { %s315_s20 = scalar_lea.vmem %s29_s19, 256  ;;  %p320_p1 = scmp.lt.s32.totalorder %s29_s19, %s29_s19 }
   0x5   :  { %p316_p0 = scmp.ne.s32.totalorder %s29_s19, %s315_s20  ;;  %p321_p2 = scmp.lt.s32.totalorder %s315_s20, %s315_s20 }
   0x7   :  { %p322_p3 = por %p321_p2, %p320_p1 }
   0x9   :  { %p323_p4 = pnand %p322_p3, %p316_p0 }
   0xb   :  { %326 = shalt.err (!%p323_p4)
}
   0xc   :  { %s394_s21 = smov 128   ;;  %s395_s22 = smov 8  }
   0xd   :  { %34 = dma.hbm_to_vmem [thread:$0]  %s452_s1, 256, %s29_s19, [#allocation6], %s394_s21, %s394_s21, %s395_s22  }
   0xe   :  { %s396_s25 = smov [#allocation2]   ;;  %s397_s27 = smov [#allocation7]  }
   0xf   :  { %s19_s26 = sshll.u32 %s396_s25, 4  ;;  %s42_s28 = sshll.u32 %s397_s27, 4  ;;  %s20_s26 = int_to_ptr.vmem [resolvable:$true] %s19_s26  ;;  %s43_s28 = int_to_ptr.vmem [resolvable:$true] %s42_s28 }
  0x10   :  { %s335_s29 = scalar_lea.vmem %s20_s26, 128  ;;  %p340_p6 = scmp.lt.s32.totalorder %s20_s26, %s20_s26 }
  0x11   :  { %p336_p5 = scmp.ne.s32.totalorder %s20_s26, %s335_s29  ;;  %p341_p7 = scmp.lt.s32.totalorder %s335_s29, %s335_s29 }
  0x13   :  { %p342_p8 = por %p341_p7, %p340_p6 }
  0x15   :  { %p343_p9 = pnand %p342_p8, %p336_p5 }
  0x17   :  { %346 = shalt.err (!%p343_p9)
}
  0x18   :  { %22 = dma.hbm_to_vmem [thread:$0]  %s451_s0, 128, %s20_s26, [#allocation3]  }
  0x19   :  { %s355_s7 = scalar_lea.vmem %s43_s28, 4096  ;;  %p360_p11 = scmp.lt.s32.totalorder %s43_s28, %s43_s28 }
  0x1a   :  { %p356_p10 = scmp.ne.s32.totalorder %s43_s28, %s355_s7  ;;  %p361_p12 = scmp.lt.s32.totalorder %s355_s7, %s355_s7 }
  0x1c   :  { %p362_p13 = por %p361_p12, %p360_p11 }
  0x1e   :  { %p363_p0 = pnand %p362_p13, %p356_p10 }
  0x20   :  { %366 = shalt.err (!%p363_p0)
}
  0x21   :  { %s398_s1 = smov 256   ;;  %s399_s8 = smov 16  }
  0x22   :  { %48 = dma.hbm_to_vmem [thread:$0]  %s454_s3, 4096, %s43_s28, [#allocation6], %s398_s1, %s398_s1, %s399_s8  }
  0x23   :  { %387 = dma.done.wait [#allocation3], 128  }
  0x24   :  { %388 = vsyncadd [#allocation3], 4294967168 }
  0x25   :  { %389 = dma.done.wait [#allocation6], 4352  }
  0x26   :  { %390 = vsyncadd [#allocation6], 4294962944  ;;  %v400_v0 = vmov 0.0   ;;  %vm401_vm0 = vmmov 0   ;;  %vm74_vm1 = vcmask 1045504   ;;  %v61_v2 = vld [vmem:[#allocation5] sm:$0xff]  ;;  %v183_v41 = vlaneseq }
  0x27   :  { %290 = vmatprep.subr.mxu0 %v400_v0  ;;  %294 = vmatprep.mubr.msk.f32.mxu0 %vm401_vm0, %v400_v0  ;;  %v62_v1 = vld [vmem:[#allocation5 + $0x8] sm:$0x3f]  ;;  %v60_v3 = vld [vmem:[#allocation2] sm:$0xff]  ;;  %vm70_vm2 = vcmask 113664   ;;  %v179_v5 = vld [vmem:[#allocation7 + $0xf0] sm:$0xff]  ;;  %s402_s13 = smov [#allocation8]  }
  0x28   :  { %257 = vmatprep.mubr.f32.mxu1 %v400_v0  ;;  %291 = vmatpush3.msk.msra.mxu0 %vm74_vm1, %v62_v1  ;;  %v180_v4 = vld [vmem:[#allocation7 + $0xf8] sm:$0xff]  ;;  %v178_v6 = vld [vmem:[#allocation7 + $0xe8] sm:$0xff]  ;;  %v177_v7 = vld [vmem:[#allocation7 + $0xe0] sm:$0xff]  ;;  %v184_v42 = vshrl.u32 %v183_v41, 7 }
  0x29   :  { %292 = vmatprep.subr.mxu0 %v400_v0  ;;  %193 = vmatprep.subr.mxu1 %v180_v4  ;;  %v176_v8 = vld [vmem:[#allocation7 + $0xd8] sm:$0xff]  ;;  %v175_v9 = vld [vmem:[#allocation7 + $0xd0] sm:$0xff]  ;;  %v174_v10 = vld [vmem:[#allocation7 + $0xc8] sm:$0xff] }
  0x2a   :  { %293 = vmatpush3.msra.mxu0 %v61_v2  ;;  %194 = vmatpush1.msra.mxu1 %v179_v5  ;;  %v173_v11 = vld [vmem:[#allocation7 + $0xc0] sm:$0xff]  ;;  %v172_v12 = vld [vmem:[#allocation7 + $0xb8] sm:$0xff]  ;;  %v171_v13 = vld [vmem:[#allocation7 + $0xb0] sm:$0xff]  ;;  %v185_v43 = vsub.s32 0, %v184_v42  ;;  %v189_v45 = vsub.s32 1, %v184_v42 }
  0x2b   :  { %295 = vmatmul.mubr.msk.f32.vlgmr.msra.gmra.mxu0 %vm70_vm2, %v60_v3  ;;  %195 = vmatprep.subr.mxu1 %v178_v6  ;;  %v170_v14 = vld [vmem:[#allocation7 + $0xa8] sm:$0xff]  ;;  %v169_v15 = vld [vmem:[#allocation7 + $0xa0] sm:$0xff]  ;;  %v168_v16 = vld [vmem:[#allocation7 + $0x98] sm:$0xff] }
  0x2c   :  { %196 = vmatpush1.msra.mxu1 %v177_v7  ;;  %v167_v17 = vld [vmem:[#allocation7 + $0x90] sm:$0xff]  ;;  %v166_v18 = vld [vmem:[#allocation7 + $0x88] sm:$0xff]  ;;  %v165_v19 = vld [vmem:[#allocation7 + $0x80] sm:$0xff] }
  0x2d   :  { %197 = vmatprep.subr.mxu1 %v176_v8  ;;  %v164_v20 = vld [vmem:[#allocation7 + $0x78] sm:$0xff]  ;;  %v163_v21 = vld [vmem:[#allocation7 + $0x70] sm:$0xff]  ;;  %v162_v22 = vld [vmem:[#allocation7 + $0x68] sm:$0xff] }
  0x2e   :  { %198 = vmatpush1.msra.mxu1 %v175_v9  ;;  %v161_v23 = vld [vmem:[#allocation7 + $0x60] sm:$0xff]  ;;  %v160_v24 = vld [vmem:[#allocation7 + $0x58] sm:$0xff]  ;;  %v159_v25 = vld [vmem:[#allocation7 + $0x50] sm:$0xff] }
  0x2f   :  { %199 = vmatprep.subr.mxu1 %v174_v10  ;;  %v158_v26 = vld [vmem:[#allocation7 + $0x48] sm:$0xff]  ;;  %v157_v27 = vld [vmem:[#allocation7 + $0x40] sm:$0xff]  ;;  %v156_v28 = vld [vmem:[#allocation7 + $0x38] sm:$0xff] }
  0x30   :  { %200 = vmatpush1.msra.mxu1 %v173_v11  ;;  %v155_v29 = vld [vmem:[#allocation7 + $0x30] sm:$0xff]  ;;  %v154_v30 = vld [vmem:[#allocation7 + $0x28] sm:$0xff]  ;;  %v153_v31 = vld [vmem:[#allocation7 + $0x20] sm:$0xff] }
  0x31   :  { %201 = vmatprep.subr.mxu1 %v172_v12  ;;  %v152_v32 = vld [vmem:[#allocation7 + $0x18] sm:$0xff]  ;;  %v151_v33 = vld [vmem:[#allocation7 + $0x10] sm:$0xff]  ;;  %v150_v34 = vld [vmem:[#allocation7 + $0x8] sm:$0xff] }
  0x32   :  { %202 = vmatpush1.msra.mxu1 %v171_v13  ;;  %v149_v35 = vld [vmem:[#allocation7] sm:$0xff]  ;;  %v284_v36 = vld [vmem:[%s453_s2] ss:$0 sm:$0xff]  ;;  %s274_s2 = sshll.u32 %s402_s13, 4  ;;  %s275_s2 = int_to_ptr.vmem [resolvable:$true] %s274_s2 }
  0x33   :  { %203 = vmatprep.subr.mxu1 %v170_v14  ;;  %v181_v44 = vld [vmem:[%s455_s4] sm:$0x3]  ;;  %s367_s14 = scalar_lea.vmem %s275_s2, 256  ;;  %p372_p2 = scmp.lt.s32.totalorder %s275_s2, %s275_s2 }
  0x34   :  { %204 = vmatpush1.msra.mxu1 %v169_v15  ;;  %v186_v46 = vrot.slane %v181_v44, %v185_v43  ;;  %v190_v47 = vrot.slane %v181_v44, %v189_v45  ;;  %p368_p1 = scmp.ne.s32.totalorder %s275_s2, %s367_s14  ;;  %p373_p3 = scmp.lt.s32.totalorder %s367_s14, %s367_s14 }
  0x35   :  { %205 = vmatprep.subr.mxu1 %v168_v16 }
  0x36   :  { %206 = vmatpush1.msra.mxu1 %v167_v17  ;;  %p374_p4 = por %p373_p3, %p372_p2 }
  0x37   :  { %207 = vmatprep.subr.mxu1 %v166_v18 }
  0x38   :  { %208 = vmatpush1.msra.mxu1 %v165_v19  ;;  %p375_p5 = pnand %p374_p4, %p368_p1 }
  0x39   :  { %209 = vmatprep.subr.mxu1 %v164_v20 }
  0x3a   :  { %210 = vmatpush1.msra.mxu1 %v163_v21 }
  0x3b   :  { %211 = vmatprep.subr.mxu1 %v162_v22 }
  0x3c   :  { %212 = vmatpush1.msra.mxu1 %v161_v23 }
  0x3d   :  { %213 = vmatprep.subr.mxu1 %v160_v24 }
  0x3e   :  { %214 = vmatpush1.msra.mxu1 %v159_v25 }
  0x3f   :  { %215 = vmatprep.subr.mxu1 %v158_v26 }
  0x40   :  { %216 = vmatpush1.msra.mxu1 %v157_v27 }
  0x41   :  { %217 = vmatprep.subr.mxu1 %v156_v28 }
  0x42   :  { %218 = vmatpush1.msra.mxu1 %v155_v29 }
  0x43   :  { %219 = vmatprep.subr.mxu1 %v154_v30 }
  0x44   :  { %220 = vmatpush1.msra.mxu1 %v153_v31 }
  0x45   :  { %221 = vmatprep.subr.mxu1 %v152_v32 }
  0x46   :  { %222 = vmatpush1.msra.mxu1 %v151_v33 }
  0x47   :  { %223 = vmatprep.subr.mxu1 %v150_v34 }
  0x48   :  { %224 = vmatpush1.msra.mxu1 %v149_v35 }
  0xeb   :  { %v144_v37 = vpop.f32.mrf.mxu0 }
  0xec   :  { %v145_v38 = vadd.f32 %v284_v36, %v144_v37 }
  0xed   :  { %v296_v39 = vpop.f32.mrf.mxu0 }
  0xee   :  { %v148_v40 = vmax.f32 %v145_v38, 0.0 }
  0xf0   :  { %258 = vmatmul.mubr.f32.vlgmr.msra.gmra.mxu1 %v148_v40 }
 0x1b0   :  { %v259_v48 = vpop.f32.mrf.mxu1 }
 0x1b1   :  { %v260_v49 = vadd.f32 %v259_v48, %v186_v46 }
 0x1b2   :  { %v261_v50 = vpop.f32.mrf.mxu1 }
 0x1b3   :  { %v264_v51 = vmax.f32 %v260_v49, 0.0  ;;  %v262_v52 = vadd.f32 %v261_v50, %v190_v47 }
 0x1b5   :  { %266 = vst [vmem:[#allocation8] sm:$0xff] %v264_v51  ;;  %v265_v53 = vmax.f32 %v262_v52, 0.0 }
 0x1b7   :  { %267 = vst [vmem:[#allocation8 + $0x8] sm:$0xff] %v265_v53 }
 0x1b8   :  { %378 = shalt.err (!%p375_p5)
}
 0x1b9   :  { %277 = dma.vmem_to_hbm [thread:$0]  %s275_s2, 256, %s456_s5, [#allocation4]  }
 0x1ba   :  { %391 = dma.done.wait [#allocation4], 256  }
 0x1bb   :  { %392 = vsyncadd [#allocation4], 4294967040 }
 0x1bc   :  { %281 = vsyncpa [#allocation3], 1 }
 0x1bd   :  { %282 = vsyncpa [#allocation6], 1 }
 0x1be   :  { %283 = vsyncpa [#allocation4], 1 }

</bundles_post_ra>
